<compile_context>
chip_gen: v5e
topology: v5e:2x2
jax: 0.10.0
libtpu: 0.0.40
codegen_flags: <defaults>
</compile_context>

<pallas_src>
import functools

import jax
import jax.numpy as jnp
from jax.experimental import pallas as pl
from jax.experimental.pallas import tpu as pltpu


def _round_up(x, m):
    return (x + m - 1) // m * m


def _choose_tile_n(n):
    """Row tile: >= 2 grid steps where possible, multiple of 8, <= 2048 rows."""
    tile = _round_up(max(-(-n // 2), 1), 8)
    return max(8, min(2048, tile))


def _bigram_logits_loss_kernel(idx_ref, tgt_ref, table_ref, logits_ref,
                               nll_ref, *, n_valid):
    """One (tile_n, V) row tile: embedding lookup + masked per-tile CE sum."""
    tile_n = idx_ref.shape[0]
    V = table_ref.shape[1]

    # one-hot(idx) @ table == exact f32 row gather on the MXU (small vocab).
    col = jax.lax.broadcasted_iota(jnp.int32, (tile_n, V), 1)
    one_hot = (col == idx_ref[...]).astype(jnp.float32)            # (tile_n, V)
    logits = jnp.dot(one_hot, table_ref[...],
                     preferred_element_type=jnp.float32)            # (tile_n, V)
    logits_ref[...] = logits

    # per-row cross entropy: logsumexp(logits) - logits[target]
    m = jnp.max(logits, axis=-1, keepdims=True)                     # (tile_n, 1)
    shifted = logits - m
    lse = jnp.log(jnp.sum(jnp.exp(shifted), axis=-1, keepdims=True))
    # reuse `shifted`; the max-shift cancels, so no second one-hot matmul.
    # NOTE: targets are assumed to lie in [0, V); PyTorch ignore_index=-100
    # semantics are not implemented (the reference module does not use it).
    tgt_shifted = jnp.sum(jnp.where(col == tgt_ref[...], shifted, 0.0),
                          axis=-1, keepdims=True)
    nll = lse - tgt_shifted                                          # (tile_n, 1)

    # Mask rows past the true N (ragged last tile / padded idx rows), reduce
    # to one scalar per tile, and store it as a single lane-dense (8, 128)
    # splat block: one unmasked vst instead of tile_n/8 masked ones.
    row = (pl.program_id(0) * tile_n
           + jax.lax.broadcasted_iota(jnp.int32, (tile_n, 1), 0))
    partial = jnp.sum(jnp.where(row < n_valid, nll, 0.0))
    nll_ref[...] = jnp.broadcast_to(partial, nll_ref.shape)


def _bigram_logits_kernel(idx_ref, table_ref, logits_ref):
    """Inference path: lookup only, no loss math."""
    tile_n = idx_ref.shape[0]
    V = table_ref.shape[1]
    col = jax.lax.broadcasted_iota(jnp.int32, (tile_n, V), 1)
    one_hot = (col == idx_ref[...]).astype(jnp.float32)
    logits_ref[...] = jnp.dot(one_hot, table_ref[...],
                              preferred_element_type=jnp.float32)


def bigram_forward(idx, table, targets=None):
    """Equivalent of BigramLanguageModel.forward.

    idx:     (B, T) int token ids
    table:   (V, V) float32 embedding table (nn.Embedding(vocab, vocab).weight)
    targets: optional (B, T) int token ids
    Returns (logits, loss):
      - with targets:    logits (B*T, V) float32, loss scalar float32
      - without targets: logits (B, T, V) float32, loss None
    """
    B, T = idx.shape
    V = table.shape[0]
    N = B * T
    table = table.astype(jnp.float32)

    # Tiny-N inference (generate()-style): a plain XLA gather beats paying
    # the pallas_call / DMA setup for a few KiB of traffic.
    if targets is None and N < 512:
        return table[idx], None

    tile_n = _choose_tile_n(N)
    n_tiles = -(-N // tile_n)
    n_pad = n_tiles * tile_n
    grid = (n_tiles,)

    # Logits land directly in an (N, V) output; Pallas masks the ragged last
    # block.  Only when N < 8 (output block would exceed the sublane extent)
    # do we pad the output and slice back.
    n_out = N if N >= 8 else n_pad

    # Only the tiny int32 index columns are padded to a whole number of tiles.
    idx_col = jnp.pad(idx.reshape(N, 1).astype(jnp.int32),
                      ((0, n_pad - N), (0, 0)))

    row_spec = pl.BlockSpec((tile_n, 1), lambda i: (i, 0))
    # Grid-resident (V, V) table: small-vocab design (see header comment).
    table_spec = pl.BlockSpec((V, V), lambda i: (0, 0))
    logits_spec = pl.BlockSpec((tile_n, V), lambda i: (i, 0))       # lane-dense

    # Scoped-VMEM budget from tile shapes (double-buffered logits tile,
    # resident table, in-kernel temporaries) with headroom; <= v7x's 64 MiB.
    need = 4 * (2 * V * V + 8 * tile_n * V + 32 * tile_n)
    vmem_limit = int(min(64 * 2**20, max(16 * 2**20, 2 * need)))
    cparams = pltpu.CompilerParams(
        dimension_semantics=("parallel",),
        vmem_limit_bytes=vmem_limit)

    if targets is None:
        cost = pl.CostEstimate(
            flops=2 * n_pad * V * V,
            transcendentals=0,
            bytes_accessed=4 * (N * V + V * V + n_pad))
        logits = pl.pallas_call(
            _bigram_logits_kernel,
            out_shape=jax.ShapeDtypeStruct((n_out, V), jnp.float32),
            grid=grid,
            in_specs=[row_spec, table_spec],
            out_specs=logits_spec,
            compiler_params=cparams,
            cost_estimate=cost,
        )(idx_col, table)
        if n_out != N:
            logits = logits[:N]
        return logits.reshape(B, T, V), None

    tgt_col = jnp.pad(targets.reshape(N, 1).astype(jnp.int32),
                      ((0, n_pad - N), (0, 0)))
    # Per-tile CE partial sums: one lane-dense (1, 8, 128) block per grid step.
    nll_spec = pl.BlockSpec((1, 8, 128), lambda i: (i, 0, 0))
    cost = pl.CostEstimate(
        flops=2 * n_pad * V * V + 6 * n_pad * V,
        transcendentals=n_pad * V + n_pad,
        bytes_accessed=4 * (N * V + V * V + 2 * n_pad + n_tiles * 8 * 128))
    logits, nll_part = pl.pallas_call(
        functools.partial(_bigram_logits_loss_kernel, n_valid=N),
        out_shape=(jax.ShapeDtypeStruct((n_out, V), jnp.float32),
                   jax.ShapeDtypeStruct((n_tiles, 8, 128), jnp.float32)),
        grid=grid,
        in_specs=[row_spec, row_spec, table_spec],
        out_specs=(logits_spec, nll_spec),
        compiler_params=cparams,
        cost_estimate=cost,
    )(idx_col, tgt_col, table)

    if n_out != N:
        logits = logits[:N]
    # Padded / ragged rows were masked inside the kernel; finish mean here.
    loss = jnp.sum(nll_part[:, 0, 0]) / N
    return logits, loss


if __name__ == "__main__":
    # Small, deterministic example consistent with the module:
    # vocab_size = 128 (lane-aligned), batch B = 2, sequence T = 8.
    V, B, T = 128, 2, 8
    key = jax.random.PRNGKey(0)
    k_tab, k_idx, k_tgt = jax.random.split(key, 3)

    # nn.Embedding(vocab_size, vocab_size) weight, ~N(0, 1) init
    table = jax.random.normal(k_tab, (V, V), dtype=jnp.float32)
    idx = jax.random.randint(k_idx, (B, T), 0, V, dtype=jnp.int32)
    targets = jax.random.randint(k_tgt, (B, T), 0, V, dtype=jnp.int32)

    # Training path: Pallas kernel, logits (B*T, V) + scalar loss
    logits, loss = bigram_forward(idx, table, targets)
    jax.block_until_ready((logits, loss))

    # Inference path (targets=None): tiny N takes the XLA-gather bypass
    logits_nt, loss_nt = bigram_forward(idx, table, None)
    jax.block_until_ready(logits_nt)
    assert loss_nt is None and logits_nt.shape == (B, T, V)

    # Pure-JAX reference check (small case)
    N = B * T
    ref_logits = table[idx].reshape(N, V)
    ref_lse = jax.scipy.special.logsumexp(ref_logits, axis=-1)
    ref_loss = jnp.mean(ref_lse - ref_logits[jnp.arange(N), targets.reshape(-1)])

    assert logits.shape == (N, V)
    assert jnp.allclose(logits, ref_logits, atol=1e-5), "logits mismatch"
    assert jnp.allclose(loss, ref_loss, atol=1e-4), "loss mismatch"
    assert jnp.allclose(logits_nt.reshape(N, V), ref_logits, atol=1e-5)

    # Second check: multi-tile (gridded, pipelined) path for both kernels.
    B2, T2 = 4, 256                       # N = 1024 -> tile_n = 512, grid = (2,)
    k_idx2, k_tgt2 = jax.random.split(jax.random.PRNGKey(1), 2)
    idx2 = jax.random.randint(k_idx2, (B2, T2), 0, V, dtype=jnp.int32)
    tgt2 = jax.random.randint(k_tgt2, (B2, T2), 0, V, dtype=jnp.int32)

    logits2, loss2 = bigram_forward(idx2, table, tgt2)
    logits2_nt, _ = bigram_forward(idx2, table, None)   # N >= 512: Pallas path
    jax.block_until_ready((logits2, loss2, logits2_nt))

    N2 = B2 * T2
    ref_logits2 = table[idx2].reshape(N2, V)
    ref_lse2 = jax.scipy.special.logsumexp(ref_logits2, axis=-1)
    ref_loss2 = jnp.mean(ref_lse2 - ref_logits2[jnp.arange(N2), tgt2.reshape(-1)])
    assert jnp.allclose(logits2, ref_logits2, atol=1e-5), "tiled logits mismatch"
    assert jnp.allclose(loss2, ref_loss2, atol=1e-4), "tiled loss mismatch"
    assert jnp.allclose(logits2_nt.reshape(N2, V), ref_logits2, atol=1e-5), \
        "tiled inference logits mismatch"

    # TODO(synk): generate() (autoregressive multinomial sampling loop) is
    # host-side control flow (jax.random.categorical) around this forward;
    # not implemented as a kernel.
    print("KERNEL_OK")
</pallas_src>

<mosaic_0001>
module attributes {stable_mosaic.version = 11 : i64} {
  func.func @_bigram_logits_loss_kernel(%arg0: i32, %arg1: memref<8x1xi32, #tpu.memory_space<vmem>>, %arg2: memref<8x1xi32, #tpu.memory_space<vmem>>, %arg3: memref<128x128xf32, #tpu.memory_space<vmem>>, %arg4: memref<8x128xf32, #tpu.memory_space<vmem>>, %arg5: memref<1x8x128xf32, #tpu.memory_space<vmem>>) attributes {dimension_semantics = [#tpu.dimension_semantics<parallel>], iteration_bounds = array<i64: 2>, scalar_prefetch = 0 : i64, scratch_operands = 0 : i64, tpu.core_type = #tpu.core_type<tc>, window_params = [{transform_indices = @transform_0, window_bounds = array<i64: 8, 1>}, {transform_indices = @transform_1, window_bounds = array<i64: 8, 1>}, {pipeline_mode = #tpu.pipeline_mode<synchronous>, transform_indices = @transform_2, window_bounds = array<i64: 128, 128>}, {transform_indices = @transform_3, window_bounds = array<i64: 8, 128>}, {transform_indices = @transform_4, window_bounds = array<i64: 1, 8, 128>}]} {
    %0 = tpu.iota {dimensions = array<i32: 1>} : vector<8x128xi32>
    %c0 = arith.constant 0 : index
    %c0_0 = arith.constant 0 : index
    %1 = vector.load %arg1[%c0, %c0_0] : memref<8x1xi32, #tpu.memory_space<vmem>>, vector<8x1xi32>
    %2 = vector.broadcast %1 : vector<8x1xi32> to vector<8x128xi32>
    %3 = arith.cmpi eq, %0, %2 : vector<8x128xi32>
    %4 = arith.extui %3 : vector<8x128xi1> to vector<8x128xi32>
    %5 = arith.sitofp %4 : vector<8x128xi32> to vector<8x128xf32>
    %c0_1 = arith.constant 0 : index
    %c0_2 = arith.constant 0 : index
    %6 = vector.load %arg3[%c0_1, %c0_2] : memref<128x128xf32, #tpu.memory_space<vmem>>, vector<128x128xf32>
    %cst = arith.constant dense<0.000000e+00> : vector<8x128xf32>
    %7 = tpu.matmul %5, %6, %cst {dimension_numbers = #tpu.dot_dimension_numbers<[1], [0], [0], [1], [0, 0, 1, 1], [], []>} : vector<8x128xf32>, vector<128x128xf32>, vector<8x128xf32> -> vector<8x128xf32>
    %c0_3 = arith.constant 0 : index
    %c0_4 = arith.constant 0 : index
    %8 = vector.load %arg4[%c0_3, %c0_4] : memref<8x128xf32, #tpu.memory_space<vmem>>, vector<8x128xf32>
    tpu.vector_store %arg4[%c0_3, %c0_4], %7 {strides = array<i32>} : memref<8x128xf32, #tpu.memory_space<vmem>>, vector<8x128xf32>,
    %cst_5 = arith.constant dense<0xFF800000> : vector<8xf32>
    %9 = vector.multi_reduction <maximumf>, %7, %cst_5 [1] : vector<8x128xf32> to vector<8xf32>
    %10 = vector.shape_cast %9 : vector<8xf32> to vector<8x1xf32>
    %11 = vector.broadcast %10 : vector<8x1xf32> to vector<8x128xf32>
    %12 = arith.subf %7, %11 : vector<8x128xf32>
    %13 = math.exp %12 : vector<8x128xf32>
    %cst_6 = arith.constant dense<0.000000e+00> : vector<8xf32>
    %14 = vector.multi_reduction <add>, %13, %cst_6 [1] : vector<8x128xf32> to vector<8xf32>
    %15 = vector.shape_cast %14 : vector<8xf32> to vector<8x1xf32>
    %16 = math.log %15 : vector<8x1xf32>
    %c0_7 = arith.constant 0 : index
    %c0_8 = arith.constant 0 : index
    %17 = vector.load %arg2[%c0_7, %c0_8] : memref<8x1xi32, #tpu.memory_space<vmem>>, vector<8x1xi32>
    %18 = vector.broadcast %17 : vector<8x1xi32> to vector<8x128xi32>
    %19 = arith.cmpi eq, %0, %18 : vector<8x128xi32>
    %cst_9 = arith.constant 0.000000e+00 : f32
    %20 = vector.broadcast %cst_9 : f32 to vector<8x128xf32>
    %21 = arith.select %19, %12, %20 : vector<8x128xi1>, vector<8x128xf32>
    %cst_10 = arith.constant dense<0.000000e+00> : vector<8xf32>
    %22 = vector.multi_reduction <add>, %21, %cst_10 [1] : vector<8x128xf32> to vector<8xf32>
    %23 = vector.shape_cast %22 : vector<8xf32> to vector<8x1xf32>
    %24 = arith.subf %16, %23 : vector<8x1xf32>
    %c8_i32 = arith.constant 8 : i32
    %25 = arith.muli %arg0, %c8_i32 : i32
    %26 = tpu.iota {dimensions = array<i32: 0>} : vector<8x1xi32>
    %27 = vector.broadcast %25 : i32 to vector<8x1xi32>
    %28 = arith.addi %27, %26 : vector<8x1xi32>
    %c16_i32 = arith.constant 16 : i32
    %29 = vector.broadcast %c16_i32 : i32 to vector<8x1xi32>
    %30 = arith.cmpi slt, %28, %29 : vector<8x1xi32>
    %cst_11 = arith.constant 0.000000e+00 : f32
    %31 = vector.broadcast %cst_11 : f32 to vector<8x1xf32>
    %32 = arith.select %30, %24, %31 : vector<8x1xi1>, vector<8x1xf32>
    %33 = vector.shape_cast %32 : vector<8x1xf32> to vector<1x8x1xf32>
    %cst_12 = arith.constant dense<0.000000e+00> : vector<1xf32>
    %34 = vector.multi_reduction <add>, %33, %cst_12 [1, 2] : vector<1x8x1xf32> to vector<1xf32>
    %35 = vector.shape_cast %34 : vector<1xf32> to vector<1x1x1xf32>
    %36 = vector.extract %35[0, 0, 0] : f32 from vector<1x1x1xf32>
    %37 = vector.broadcast %36 : f32 to vector<1x8x128xf32>
    %c0_13 = arith.constant 0 : index
    %c0_14 = arith.constant 0 : index
    %c0_15 = arith.constant 0 : index
    %38 = vector.load %arg5[%c0_13, %c0_14, %c0_15] : memref<1x8x128xf32, #tpu.memory_space<vmem>>, vector<1x8x128xf32>
    tpu.vector_store %arg5[%c0_13, %c0_14, %c0_15], %37 {strides = array<i32>} : memref<1x8x128xf32, #tpu.memory_space<vmem>>, vector<1x8x128xf32>,
    return
  }
  func.func @transform_0(%arg0: i32) -> (i32, i32) {
    %c0_i32 = arith.constant 0 : i32
    %c0_i32_0 = arith.constant 0 : i32
    return %arg0, %c0_i32 : i32, i32
  }
  func.func @transform_1(%arg0: i32) -> (i32, i32) {
    %c0_i32 = arith.constant 0 : i32
    %c0_i32_0 = arith.constant 0 : i32
    return %arg0, %c0_i32 : i32, i32
  }
  func.func @transform_2(%arg0: i32) -> (i32, i32) {
    %c0_i32 = arith.constant 0 : i32
    %c0_i32_0 = arith.constant 0 : i32
    %c0_i32_1 = arith.constant 0 : i32
    return %c0_i32, %c0_i32_0 : i32, i32
  }
  func.func @transform_3(%arg0: i32) -> (i32, i32) {
    %c0_i32 = arith.constant 0 : i32
    %c0_i32_0 = arith.constant 0 : i32
    return %arg0, %c0_i32 : i32, i32
  }
  func.func @transform_4(%arg0: i32) -> (i32, i32, i32) {
    %c0_i32 = arith.constant 0 : i32
    %c0_i32_0 = arith.constant 0 : i32
    %c0_i32_1 = arith.constant 0 : i32
    return %arg0, %c0_i32, %c0_i32_0 : i32, i32, i32
  }
}

</mosaic_0001>

<bundles_post_ra>
// kernel: tpu_custom_call.1
= control target key start
LH: loop header
LB: loop body
LE: loop exit
PB: predicated region body
PF: predicated region fallthrough
CT: control target
= control target key end

     0   :  { %10 = vsyncpa [#allocation3], 0  ;;  %s855_s0 = inlined_call_operand.vmem [shape: s32[16,1], index: 0, kind: input, shape index: {}]   ;;  %s856_s1 = inlined_call_operand.vmem [shape: s32[16,1], index: 1, kind: input, shape index: {}]   ;;  %s857_s2 = inlined_call_operand.hbm [shape: f32[128,128], index: 2, kind: input, shape index: {}]   ;;  %s858_s3 = inlined_call_operand.hbm [shape: f32[16,128], index: 3, kind: output, shape index: {0}]   ;;  %s859_s4 = inlined_call_operand.hbm [shape: f32[2,8,128], index: 4, kind: output, shape index: {1}]  }
   0x1   :  { %11 = vsyncpa [#allocation4], 0 }
   0x2   :  { %13 = vsyncpa [#allocation4 + $0x1], 0 }
   0x3   :  { %14 = vsyncpa [#allocation7], 0 }
   0x4   :  { %16 = vsyncpa [#allocation7 + $0x1], 0  ;;  %s719_s15 = smov 0   ;;  %s721_s16 = smov 0  }
   0x5   :  { %s723_s17 = smov 0   ;;  %s725_s18 = smov 0  }
   0x6 LB: > { %s740_s19 = sadd.s32 4294967295, %s687_s18   ;;  %s473_s20 = sadd.s32 4294967294, %s687_s18   ;;  %s687_s18 = sphi %s725_s18, %s865_s18   ;;  %s683_s17 = sphi %s723_s17, %s864_s17   ;;  %s679_s16 = sphi %s721_s16, %s863_s16   ;;  %s675_s15 = sphi %s719_s15, %s862_s15  }
   0x7   : > { %s744_s21 = sadd.s32 1, %s687_s18   ;;  %s102_s22 = sadd.s32 1, %s683_s17 }
   0x8   : > { %s99_s23 = ssub.s32 %s687_s18, %s744_s21  ;;  %p112_p0 = scmp.ne.s32.totalorder %s683_s17, %s679_s16 }
   0x9   : > { %p100_p1 = scmp.eq.s32.totalorder %s99_s23, 0  ;;  %p113_p2 = scmp.eq.s32.totalorder %s740_s19, 1 }
   0xa   : > { %p118_p3 = scmp.ne.s32.totalorder %s679_s16, %s675_s15  ;;  %p119_p4 = scmp.eq.s32.totalorder %s473_s20, 1 }
   0xb   : > { %s755_s24 = scalar_select %p100_p1, %s683_s17, %s102_s22  }
   0xc   : > { %p757_p5 = por %p113_p2, %p112_p0  ;;  %p761_p6 = por %p119_p4, %p118_p3 }
   0xd   : > { %p474_p7 = scmp.ge.s32.totalorder %s687_s18, 1  ;;  %p152_p8 = scmp.lt.s32.totalorder %s687_s18, 3 }
   0xe   : > { %p513_p9 = scmp.eq.s32.totalorder %s740_s19, 0  ;;  %s163_s29 = sshll.u32 %s857_s2, 4  ;;  %s164_s29 = int_to_ptr.hbm [resolvable:$true] %s163_s29 }
   0xf   : > { %p153_p10 = pnand %p474_p7, %p152_p8  ;;  %s689_s30 = smov [#allocation2]  }
  0x10   : > { %s165_s5 = sshll.u32 %s689_s30, 4  ;;  %s690_s6 = smov 128   ;;  %s166_s5 = int_to_ptr.vmem [resolvable:$true] %s165_s5 }
  0x11   : > { %p502_p11 = pneg %p153_p10  ;;  %s691_s7 = smov 8  }
  0x12   : > { %195 = sbr.rel (%p153_p10) target bundleno = 711 (0x2c7), region = 32 }
  0x13   : > { %p503_p12 = pnand %p513_p9, %p502_p11 }
  0x15   : > { %505 = dma.hbm_to_vmem [thread:$0]  (!%p503_p12), %s164_s29, 2048, %s166_s5, [#allocation3], %s690_s6, %s690_s6, %s691_s7  }
  0x17   : > { %662 = dma.done.wait (%p513_p9), [#allocation3], 2048  }
  0x18   : > { %664 = vsyncadd (%p513_p9), [#allocation3], 4294965248  ;;  %p230_p13 = scmp.lt.s32.totalorder %s740_s19, 1  ;;  %v692_v0 = vmov 0   ;;  %v262_v2 = vld [vmem:[#allocation2 + $0x78] sm:$0xff]  ;;  %v261_v3 = vld [vmem:[#allocation2 + $0x70] sm:$0xff]  ;;  %v238_v18 = vlaneseq }
  0x19   : > { %553 = vset.pattern.permute.xlu0 %v692_v0  ;;  %554 = vset.pattern.permute.xlu1 %v692_v0  ;;  %v260_v4 = vld [vmem:[#allocation2 + $0x68] sm:$0xff]  ;;  %v259_v5 = vld [vmem:[#allocation2 + $0x60] sm:$0xff]  ;;  %v258_v6 = vld [vmem:[#allocation2 + $0x58] sm:$0xff]  ;;  %v693_v21 = vmov 1.0   ;;  %s793_s22 = sand.u32 1, %s679_s16   ;;  %s802_s28 = sshll.u32 %s740_s19, 3 }
  0x1a   : > { %s779_s8 = scalar_select %p230_p13, %s740_s19, 1  ;;  %263 = vmatpush.msra.mxu0 %v262_v2  ;;  %v257_v7 = vld [vmem:[#allocation2 + $0x50] sm:$0xff]  ;;  %v256_v8 = vld [vmem:[#allocation2 + $0x48] sm:$0xff]  ;;  %v255_v9 = vld [vmem:[#allocation2 + $0x40] sm:$0xff]  ;;  %v239_v19 = vand.u32 127, %v238_v18  ;;  %v304_v31 = vshrl.u32 %v238_v18, 7  ;;  %v305_v32 = vstv %s802_s28 }
  0x1b   : > { %v254_v10 = vld [vmem:[#allocation2 + $0x38] sm:$0xff]  ;;  %v253_v11 = vld [vmem:[#allocation2 + $0x30] sm:$0xff]  ;;  %v252_v12 = vld [vmem:[#allocation2 + $0x28] sm:$0xff]  ;;  %s479_s23 = sshll.u32 %s793_s22, 3  ;;  %vm309_vm3 = vcmask 7168   ;;  %s338_s5 = scalar_lea.hbm %s858_s3, %s802_s28 }
  0x1c   : > { %s481_s9 = sshll.u32 %s779_s8, 3  ;;  %264 = vmatpush.msra.mxu0 %v261_v3  ;;  %v251_v13 = vld [vmem:[#allocation2 + $0x20] sm:$0xff]  ;;  %v250_v14 = vld [vmem:[#allocation2 + $0x18] sm:$0xff]  ;;  %v249_v15 = vld [vmem:[#allocation2 + $0x10] sm:$0xff]  ;;  %s798_s27 = scalar_lea.vmem [#allocation5], %s479_s23  ;;  %v306_v33 = vadd.s32 %v305_v32, %v304_v31 }
  0x1d   : > { %s233_s12 = scalar_lea.vmem %s855_s0, %s481_s9  ;;  %v248_v16 = vld [vmem:[#allocation2 + $0x8] sm:$0xff]  ;;  %v247_v17 = vld [vmem:[#allocation2] sm:$0xff]  ;;  %s237_s20 = scalar_lea.vmem %s856_s1, %s481_s9 }
  0x1e   : > { %v240_v1 = vld [vmem:[%s233_s12] sm:$0xff]  ;;  %265 = vmatpush.msra.mxu0 %v260_v4  ;;  %vm307_vm2 = vcmp.lt.s32.totalorder %v306_v33, 16  ;;  %s340_s19 = sshll.u32 %s798_s27, 4  ;;  %s342_s6 = sshll.u32 %s338_s5, 4  ;;  %s341_s19 = int_to_ptr.vmem [resolvable:$true] %s340_s19  ;;  %s343_s6 = int_to_ptr.hbm [resolvable:$true] %s342_s6 }
  0x1f   : > { %242 = vperm.xlu0 %553, %v240_v1   ;;  %v293_v22 = vld [vmem:[%s237_s20] sm:$0xff]  ;;  %s323_s7 = scalar_lea.sflag [#allocation4], %s793_s22  ;;  %s603_s8 = sshra.s32 %s343_s6, 4  ;;  %s604_s8 = int_to_ptr.hbm [resolvable:$true] %s603_s8 }
  0x20   : > { %266 = vmatpush.msra.mxu0 %v259_v5  ;;  %295 = vperm.xlu1 %554, %v293_v22   ;;  %s605_s9 = scalar_lea.hbm %s604_s8, 8  ;;  %s609_s12 = scalar_lea.hbm %s858_s3, 16 }
  0x21   : > { %p606_p0 = scmp.ne.s32.totalorder %s604_s8, %s605_s9  ;;  %p610_p3 = scmp.lt.s32.totalorder %s604_s8, %s858_s3 }
  0x22   : > { %267 = vmatpush.msra.mxu0 %v258_v6  ;;  %p611_p4 = scmp.lt.s32.totalorder %s609_s12, %s605_s9 }
  0x23   : > { %p607_p1 = pnand %p606_p0, %p757_p5 }
  0x24   : > { %268 = vmatpush.msra.mxu0 %v257_v7  ;;  %p612_p7 = por %p611_p4, %p610_p3 }
  0x25   : > { %p608_p2 = pneg %p607_p1 }
  0x26   : > { %269 = vmatpush.msra.mxu0 %v256_v8 }
  0x27   : > { %p613_p8 = pnand %p612_p7, %p608_p2 }
  0x28   : > { %270 = vmatpush.msra.mxu0 %v255_v9 }
  0x2a   : > { %271 = vmatpush.msra.mxu0 %v254_v10 }
  0x2c   : > { %272 = vmatpush.msra.mxu0 %v253_v11 }
  0x2e   : > { %273 = vmatpush.msra.mxu0 %v252_v12 }
  0x30   : > { %274 = vmatpush.msra.mxu0 %v251_v13 }
  0x32   : > { %275 = vmatpush.msra.mxu0 %v250_v14 }
  0x34   : > { %276 = vmatpush.msra.mxu0 %v249_v15 }
  0x36   : > { %277 = vmatpush.msra.mxu0 %v248_v16 }
  0x38   : > { %278 = vmatpush.msra.mxu0 %v247_v17 }
  0x91   : > { %v243_v20 = vpop.permute.xlu0 %242 }
  0x92   : > { %vm244_vm0 = vcmp.eq.s32.totalorder %v239_v19, %v243_v20  ;;  %v296_v24 = vpop.permute.xlu1 %295 }
  0x93   : > { %484 = vmatmul.msk.f32.vlgmr.msra.gmra.mxu0 %vm244_vm0, %v693_v21  ;;  %vm297_vm1 = vcmp.eq.s32.totalorder %v239_v19, %v296_v24 }
 0x110   : > { %v280_v23 = vpop.f32.mrf.mxu0 }
 0x111   : > { %283 = vst [vmem:[%s798_s27] sm:$0xff] %v280_v23  ;;  %284 = vmax.xlane.f32.xlu0 %v280_v23 }
 0x184   : > { %v285_v25 = vpop.xlane.xlu0 %284 }
 0x185   : > { %v286_v26 = vsub.f32 %v280_v23, %v285_v25 }
 0x187   : > { %v287_v27 = vmul.f32 1.442695, %v286_v26  ;;  %v298_v28 = vsel %vm297_vm1, %v286_v26, 0.0 }
 0x188   : > { %299 = vadd.xlane.f32.xlu2 %v298_v28 }
 0x189   : > { %555 = vpow2.f32 %v287_v27 }
 0x18f   : > { %v556_v29 = vpop.eup %555 }
 0x190   : > { %289 = vadd.xlane.f32.xlu1 %v556_v29 }
 0x1fb   : > { %v300_v36 = vpop.xlane.xlu2 %299 }
 0x203   : > { %v290_v30 = vpop.xlane.xlu1 %289 }
 0x204   : > { %557 = vlog2.f32 %v290_v30 }
 0x20a   : > { %v558_v34 = vpop.eup %557 }
 0x20b   : > { %v292_v35 = vmul.f32 0.6931472, %v558_v34 }
 0x20d   : > { %v301_v37 = vsub.f32 %v292_v35, %v300_v36 }
 0x20f   : > { %v308_v38 = vsel %vm307_vm2, %v301_v37, 0.0 }
 0x210   : > { %v310_v39 = vsel %vm309_vm3, %v308_v38, 0.0 }
 0x211   : > { %311 = vadd.xlane.f32.xlu2 %v310_v39 }
 0x212   : > { %616 = shalt.err (!%p613_p8)
}
 0x213   : > { %498 = dma.vmem_to_hbm [thread:$0]  (%p757_p5), %s341_s19, 128, %s343_s6, %s323_s7  }
 0x214   : > { %s352_s29 = scalar_lea.hbm %s859_s4, %s802_s28  ;;  %s229_s30 = scalar_lea.vmem [#allocation6], %s479_s23 }
 0x215   : > { %s354_s5 = sshll.u32 %s229_s30, 4  ;;  %s356_s8 = sshll.u32 %s352_s29, 4  ;;  %s355_s5 = int_to_ptr.vmem [resolvable:$true] %s354_s5  ;;  %s357_s8 = int_to_ptr.hbm [resolvable:$true] %s356_s8 }
 0x216   : > { %s328_s6 = scalar_lea.sflag [#allocation7], %s793_s22  ;;  %s631_s7 = sshra.s32 %s357_s8, 4  ;;  %s632_s7 = int_to_ptr.hbm [resolvable:$true] %s631_s7 }
 0x217   : > { %s633_s9 = scalar_lea.hbm %s632_s7, 8  ;;  %s637_s28 = scalar_lea.hbm %s859_s4, 16 }
 0x218   : > { %p634_p9 = scmp.ne.s32.totalorder %s632_s7, %s633_s9  ;;  %p638_p12 = scmp.lt.s32.totalorder %s632_s7, %s859_s4 }
 0x219   : > { %p639_p13 = scmp.lt.s32.totalorder %s637_s28, %s633_s9 }
 0x21a   : > { %p635_p10 = pnand %p634_p9, %p757_p5 }
 0x21b   : > { %p640_p0 = por %p639_p13, %p638_p12 }
 0x21c   : > { %p636_p11 = pneg %p635_p10 }
 0x21e   : > { %p641_p1 = pnand %p640_p0, %p636_p11 }
 0x284   : > { %v312_v40 = vpop.xlane.xlu2 %311 }
 0x285   : > { %v313_v41 = vrot.slane %v312_v40, 4 }
 0x287   : > { %v314_v42 = vadd.f32 %v313_v41, %v312_v40 }
 0x289   : > { %v315_v43 = vrot.slane %v314_v42, 2 }
 0x28b   : > { %v316_v44 = vadd.f32 %v315_v43, %v314_v42 }
 0x28d   : > { %v317_v45 = vrot.slane %v316_v44, 1 }
 0x28f   : > { %v318_v46 = vadd.f32 %v317_v45, %v316_v44 }
 0x291   : > { %492 = vpush %v318_v46 }
 0x2c2   : > { %s493_s19 = spop %492 }
 0x2c3   : > { %v320_v47 = vstv %s493_s19 }
 0x2c4   : > { %321 = vst [vmem:[%s229_s30] sm:$0xff] %v320_v47 }
 0x2c5   : > { %644 = shalt.err (!%p641_p1)
}
 0x2c6   : > { %499 = dma.vmem_to_hbm [thread:$0]  (%p757_p5), %s355_s5, 128, %s357_s8, %s328_s6  }
 0x2c7 PF: > { %p515_p2 = scmp.ge.s32.totalorder %s687_s18, 2  ;;  %s368_s22 = sand.u32 1, %s675_s15  }
 0x2c8   : > { %s369_s13 = scalar_lea.sflag [#allocation4], %s368_s22 }
 0x2c9   : > { %p507_p3 = pnand %p515_p2, %p761_p6 }
 0x2cb   : > { %p508_p4 = pneg %p507_p3 }
 0x2cd   : > { %666 = dma.done.wait (%p508_p4), %s369_s13, 128  }
 0x2ce   : > { %668 = vsyncadd (%p508_p4), %s369_s13, 4294967168  ;;  %s379_s14 = scalar_lea.sflag [#allocation7], %s368_s22 }
 0x2cf   : > { %670 = dma.done.wait (%p508_p4), %s379_s14, 128  }
 0x2d0   : > { %672 = vsyncadd (%p508_p4), %s379_s14, 4294967168  ;;  %p19_p5 = scmp.ge.s32.totalorder %s744_s21, 4   ;;  %s862_s15 = smov %s679_s16 }
 0x2d1   : > { %s863_s16 = smov %s683_s17  ;;  %s864_s17 = smov %s755_s24 }
 0x2d2   : > { %s865_s18 = smov %s744_s21  ;;  %21 = sbr.rel (!%p19_p5) target bundleno = 6 (0x6), region = 92 }
 0x2d7   :  { %385 = vsyncpa [#allocation3], 1 }
 0x2d8   :  { %387 = vsyncpa [#allocation3 + $0x1], 1 }
 0x2d9   :  { %388 = vsyncpa [#allocation4], 1 }
 0x2da   :  { %390 = vsyncpa [#allocation4 + $0x1], 1 }
 0x2db   :  { %391 = vsyncpa [#allocation7], 1 }
 0x2dc   :  { %393 = vsyncpa [#allocation7 + $0x1], 1 }

</bundles_post_ra>
